<compile_context>
chip_gen: v7x
topology: tpu7x:2x2x1
jax: 0.10.0
libtpu: 0.0.40
codegen_flags: <defaults>
</compile_context>

<pallas_src>
import functools

import jax
import jax.numpy as jnp
from jax import lax
from jax.experimental import pallas as pl
from jax.experimental.pallas import tpu as pltpu


_LANE = 128
_SMALL_FMAP_BYTES = 512 * 1024          # per-image threshold for the one-shot path
_TARGET_BLOCK_BYTES = 4 * 1024 * 1024   # target input-block size on the streaming path


def _vmem_limit_bytes():
    """Scoped-VMEM limit keyed off the local chip's physical VMEM:
    64 MiB on 128-MiB parts (v5e/v6e), 32 MiB on 64-MiB parts (v7x)."""
    cap = 128 * 1024 * 1024
    try:
        info = pltpu.get_tpu_info()
        c = getattr(info, "vmem_capacity_bytes", None)
        if c:
            cap = int(c)
    except Exception:
        pass
    return 64 * 1024 * 1024 if cap >= 96 * 1024 * 1024 else 32 * 1024 * 1024


def _small_kernel(x_ref, w1t_ref, w2t_ref, o_ref, *, hw):
    """One-shot path for small feature maps.

    x_ref:   (bt, C, HW)  native dtype
    w1t_ref: (C, Cr) f32  first 1x1-conv weight transposed to (in, out)
    w2t_ref: (Cr, C) f32
    o_ref:   (bt, 1, C)   attention weights, input dtype
    """
    x = x_ref[...].astype(jnp.float32)                      # (bt, C, HW)
    avg = jnp.sum(x, axis=2) * (1.0 / hw)                   # (bt, C)  AdaptiveAvgPool2d(1)
    mx = jnp.max(x, axis=2)                                 # (bt, C)  AdaptiveMaxPool2d(1)
    ha = jnp.maximum(
        jnp.dot(avg, w1t_ref[...], preferred_element_type=jnp.float32), 0.0)  # (bt, Cr)
    hm = jnp.maximum(
        jnp.dot(mx, w1t_ref[...], preferred_element_type=jnp.float32), 0.0)
    out = (jnp.dot(ha, w2t_ref[...], preferred_element_type=jnp.float32)
           + jnp.dot(hm, w2t_ref[...], preferred_element_type=jnp.float32))   # (bt, C)
    o_ref[...] = jax.nn.sigmoid(out).reshape(o_ref.shape).astype(o_ref.dtype)


def _stream_kernel(x_ref, w1_ref, w2_ref, o_ref, sum_acc, max_acc, *,
                   hw, acc_w, fold, rem):
    """Streaming path: VPU-accumulate folded (C, acc_w) partial sum/max over
    spatial tiles; XLU reduce + tiny MLP + sigmoid once per batch element.

    x_ref:   (1, C, tile_hw)  native dtype, tile_hw = fold * acc_w
    w1_ref:  (Cr, C) f32  (PyTorch 1x1-conv weight, (out, in))
    w2_ref:  (C, Cr) f32
    o_ref:   (1, C, 1)
    sum_acc/max_acc: (C, acc_w) f32 scratch.
    """
    k = pl.program_id(1)
    last = pl.num_programs(1) - 1

    @pl.when(k == 0)
    def _init():
        sum_acc[...] = jnp.zeros_like(sum_acc)
        max_acc[...] = jnp.full_like(max_acc, -jnp.inf)

    def _accumulate(xs, xm):
        # Chunked fold: combine `fold` sub-chunks before the single
        # accumulator read-modify-write (cuts scratch ld/st traffic by fold).
        s = xs[:, 0:acc_w]
        m = xm[:, 0:acc_w]
        for i in range(1, fold):
            lo = i * acc_w
            s = s + xs[:, lo:lo + acc_w]
            m = jnp.maximum(m, xm[:, lo:lo + acc_w])
        sum_acc[...] += s
        max_acc[...] = jnp.maximum(max_acc[...], m)

    if rem is None:
        # HW is a multiple of tile_hw: every tile takes the unmasked fast path.
        xt = x_ref[0].astype(jnp.float32)
        _accumulate(xt, xt)
    else:
        @pl.when(k != last)
        def _full_tile():
            xt = x_ref[0].astype(jnp.float32)
            _accumulate(xt, xt)

        @pl.when(k == last)
        def _tail_tile():
            # Only the last tile pays for masking; `rem` is a compile-time
            # constant so the mask is a single iota+compare.
            xt = x_ref[0].astype(jnp.float32)
            col = lax.broadcasted_iota(jnp.int32, xt.shape, 1)
            valid = col < rem
            _accumulate(jnp.where(valid, xt, 0.0),
                        jnp.where(valid, xt, -jnp.inf))

    @pl.when(k == last)
    def _finalize():
        avg = jnp.sum(sum_acc[...], axis=1, keepdims=True) * (1.0 / hw)   # (C, 1)
        mx = jnp.max(max_acc[...], axis=1, keepdims=True)                 # (C, 1)
        ha = jnp.maximum(
            jnp.dot(w1_ref[...], avg, preferred_element_type=jnp.float32), 0.0)  # (Cr, 1)
        hm = jnp.maximum(
            jnp.dot(w1_ref[...], mx, preferred_element_type=jnp.float32), 0.0)
        out = (jnp.dot(w2_ref[...], ha, preferred_element_type=jnp.float32)
               + jnp.dot(w2_ref[...], hm, preferred_element_type=jnp.float32))   # (C, 1)
        o_ref[...] = jax.nn.sigmoid(out)[None, :, :].astype(o_ref.dtype)


def _pick_streaming_tile(C, HW, itemsize, vmem_limit):
    """Pick (tile_hw, acc_w): tile_hw is a multiple of 128 sized for
    ~_TARGET_BLOCK_BYTES per input block, capped so 2 double-buffered input
    blocks plus the two folded f32 accumulators fit the scoped-VMEM budget."""
    hw_cols = pl.cdiv(HW, _LANE) * _LANE
    budget = vmem_limit - 8 * 1024 * 1024             # headroom for weights/output/etc.
    per_col = C * (2 * itemsize + 1)                   # 2 input buffers + ~tile/8 f32 acc
    max_cols = max(_LANE, int(budget // per_col) // _LANE * _LANE)
    target_cols = max(_LANE, int(_TARGET_BLOCK_BYTES // (C * itemsize)) // _LANE * _LANE)
    tile_hw = int(min(hw_cols, max_cols, target_cols))
    if tile_hw > 1024:
        tile_hw = (tile_hw // 1024) * 1024             # keep the 8x fold exact
        acc_w = tile_hw // 8
    else:
        acc_w = _LANE
    return tile_hw, acc_w


def channel_attention(x, w1, w2):
    """CBAM ChannelAttention forward.

    x:  (B, C, H, W), any float dtype.
    w1: (C//r, C)  Conv2d(C, C//r, 1, bias=False) weight with the 1x1 squeezed.
    w2: (C, C//r)  Conv2d(C//r, C, 1, bias=False) weight with the 1x1 squeezed.
    Returns sigmoid(MLP(avgpool(x)) + MLP(maxpool(x))): (B, C, 1, 1), x.dtype.
    """
    B, C, H, W = x.shape
    Cr = w1.shape[0]
    HW = H * W
    itemsize = x.dtype.itemsize
    out_dtype = x.dtype

    x_flat = x.reshape(B, C, HW)                 # native dtype stays in HBM
    w1_f = jnp.asarray(w1, jnp.float32)          # (Cr, C)
    w2_f = jnp.asarray(w2, jnp.float32)          # (C, Cr)

    vmem_limit = _vmem_limit_bytes()
    cost = pl.CostEstimate(
        flops=int(2 * B * C * HW + 8 * B * C * Cr + 4 * B * C),
        transcendentals=int(B * C),
        bytes_accessed=int(x_flat.size * itemsize + (w1_f.size + w2_f.size) * 4
                           + B * C * itemsize))

    per_image_bytes = C * HW * itemsize
    if per_image_bytes <= _SMALL_FMAP_BYTES:
        # One-shot path: several batch elements per block, no accumulators.
        bt = max(1, min(B, (2 * 1024 * 1024) // max(per_image_bytes, 1)))
        if B > 1:
            bt = max(1, min(bt, pl.cdiv(B, 2)))  # >=2 grid steps -> both v7x cores busy
        out = pl.pallas_call(
            functools.partial(_small_kernel, hw=HW),
            out_shape=jax.ShapeDtypeStruct((B, 1, C), out_dtype),
            grid_spec=pltpu.PrefetchScalarGridSpec(
                num_scalar_prefetch=0,
                grid=(pl.cdiv(B, bt),),
                in_specs=[
                    pl.BlockSpec((bt, C, HW), lambda b: (b, 0, 0)),
                    pl.BlockSpec((C, Cr), lambda b: (0, 0)),
                    pl.BlockSpec((Cr, C), lambda b: (0, 0)),
                ],
                out_specs=pl.BlockSpec((bt, 1, C), lambda b: (b, 0, 0)),
            ),
            compiler_params=pltpu.CompilerParams(
                dimension_semantics=("parallel",),
                vmem_limit_bytes=vmem_limit),
            cost_estimate=cost,
        )(x_flat, w1_f.T, w2_f.T)
        return out.reshape(B, C, 1, 1)

    # Streaming path.
    tile_hw, acc_w = _pick_streaming_tile(C, HW, itemsize, vmem_limit)
    n_hw = pl.cdiv(HW, tile_hw)
    rem = HW - (n_hw - 1) * tile_hw
    rem = None if rem == tile_hw else rem        # None -> no tail masking needed
    fold = tile_hw // acc_w

    kernel = functools.partial(_stream_kernel, hw=HW, acc_w=acc_w, fold=fold, rem=rem)
    # TODO(synk): v7x small-batch path — split the spatial reduction across the
    # two TensorCores (two partial accumulators + tiny combine epilogue) so B=1
    # can use the full chip's HBM bandwidth.
    out = pl.pallas_call(
        kernel,
        out_shape=jax.ShapeDtypeStruct((B, C, 1), out_dtype),
        grid_spec=pltpu.PrefetchScalarGridSpec(
            num_scalar_prefetch=0,
            grid=(B, n_hw),
            in_specs=[
                pl.BlockSpec((1, C, tile_hw), lambda b, k: (b, 0, k)),
                pl.BlockSpec((Cr, C), lambda b, k: (0, 0)),
                pl.BlockSpec((C, Cr), lambda b, k: (0, 0)),
            ],
            out_specs=pl.BlockSpec((1, C, 1), lambda b, k: (b, 0, 0)),
            scratch_shapes=[
                pltpu.VMEM((C, acc_w), jnp.float32),   # running spatial sum (folded)
                pltpu.VMEM((C, acc_w), jnp.float32),   # running spatial max (folded)
            ],
        ),
        compiler_params=pltpu.CompilerParams(
            dimension_semantics=("parallel", "arbitrary"),
            vmem_limit_bytes=vmem_limit),
        cost_estimate=cost,
    )(x_flat, w1_f, w2_f)
    return out.reshape(B, C, 1, 1)


def channel_attention_ref(x, w1, w2):
    xf = x.astype(jnp.float32)
    avg = jnp.mean(xf, axis=(2, 3))              # (B, C)
    mx = jnp.max(xf, axis=(2, 3))                # (B, C)
    hp = lax.Precision.HIGHEST

    def mlp(p):                                  # p: (B, C)
        h = jnp.maximum(jnp.dot(p, w1.astype(jnp.float32).T, precision=hp), 0.0)
        return jnp.dot(h, w2.astype(jnp.float32).T, precision=hp)

    out = jax.nn.sigmoid(mlp(avg) + mlp(mx))
    return out.reshape(*out.shape, 1, 1).astype(x.dtype)


if __name__ == "__main__":
    key = jax.random.PRNGKey(0)
    kx, k1, k2, kx2, k3, k4 = jax.random.split(key, 6)

    # 1) Small-feature-map (one-shot) path — typical late CBAM stage.
    B, C, H, W, red = 2, 64, 16, 16, 16
    Cr = C // red
    x = jax.random.normal(kx, (B, C, H, W), dtype=jnp.float32)
    # PyTorch Conv2d weights are (out, in, 1, 1); keep the (out, in) part.
    w1 = jax.random.normal(k1, (Cr, C), dtype=jnp.float32) * 0.1
    w2 = jax.random.normal(k2, (C, Cr), dtype=jnp.float32) * 0.1
    y = jax.block_until_ready(channel_attention(x, w1, w2))
    y_ref = channel_attention_ref(x, w1, w2)
    assert y.shape == (B, C, 1, 1)
    # Tolerance covers MXU-vs-XLA matmul precision differences for f32 dots.
    assert jnp.allclose(y, y_ref, atol=5e-3, rtol=5e-3), \
        float(jnp.max(jnp.abs(y - y_ref)))

    # 2) Streaming path — exercises folded accumulators + tail masking.
    B2, C2, H2, W2 = 2, 128, 48, 48
    Cr2 = C2 // red
    x2 = jax.random.normal(kx2, (B2, C2, H2, W2), dtype=jnp.float32)
    w1b = jax.random.normal(k3, (Cr2, C2), dtype=jnp.float32) * 0.1
    w2b = jax.random.normal(k4, (C2, Cr2), dtype=jnp.float32) * 0.1
    y2 = jax.block_until_ready(channel_attention(x2, w1b, w2b))
    y2_ref = channel_attention_ref(x2, w1b, w2b)
    assert y2.shape == (B2, C2, 1, 1)
    assert jnp.allclose(y2, y2_ref, atol=5e-3, rtol=5e-3), \
        float(jnp.max(jnp.abs(y2 - y2_ref)))

    print("KERNEL_OK")
</pallas_src>

<mosaic_0001>
module attributes {stable_mosaic.version = 11 : i64} {
  func.func @_small_kernel(%arg0: i32, %arg1: memref<1x64x256xf32, #tpu.memory_space<vmem>>, %arg2: memref<64x4xf32, #tpu.memory_space<vmem>>, %arg3: memref<4x64xf32, #tpu.memory_space<vmem>>, %arg4: memref<1x1x64xf32, #tpu.memory_space<vmem>>) attributes {dimension_semantics = [#tpu.dimension_semantics<parallel>], iteration_bounds = array<i64: 2>, scalar_prefetch = 0 : i64, scratch_operands = 0 : i64, tpu.core_type = #tpu.core_type<tc>, window_params = [{transform_indices = @transform_0, window_bounds = array<i64: 1, 64, 256>}, {pipeline_mode = #tpu.pipeline_mode<synchronous>, transform_indices = @transform_1, window_bounds = array<i64: 64, 4>}, {pipeline_mode = #tpu.pipeline_mode<synchronous>, transform_indices = @transform_2, window_bounds = array<i64: 4, 64>}, {transform_indices = @transform_3, window_bounds = array<i64: 1, 1, 64>}]} {
    %c0 = arith.constant 0 : index
    %c0_0 = arith.constant 0 : index
    %c0_1 = arith.constant 0 : index
    %0 = vector.load %arg1[%c0, %c0_0, %c0_1] : memref<1x64x256xf32, #tpu.memory_space<vmem>>, vector<1x64x256xf32>
    %cst = arith.constant dense<0.000000e+00> : vector<1x64xf32>
    %1 = vector.multi_reduction <add>, %0, %cst [2] : vector<1x64x256xf32> to vector<1x64xf32>
    %cst_2 = arith.constant 3.906250e-03 : f32
    %2 = vector.broadcast %cst_2 : f32 to vector<1x64xf32>
    %3 = arith.mulf %1, %2 : vector<1x64xf32>
    %cst_3 = arith.constant dense<0xFF800000> : vector<1x64xf32>
    %4 = vector.multi_reduction <maximumf>, %0, %cst_3 [2] : vector<1x64x256xf32> to vector<1x64xf32>
    %c0_4 = arith.constant 0 : index
    %c0_5 = arith.constant 0 : index
    %5 = vector.load %arg2[%c0_4, %c0_5] : memref<64x4xf32, #tpu.memory_space<vmem>>, vector<64x4xf32>
    %cst_6 = arith.constant dense<0.000000e+00> : vector<1x4xf32>
    %6 = tpu.matmul %3, %5, %cst_6 {dimension_numbers = #tpu.dot_dimension_numbers<[1], [0], [0], [1], [0, 0, 1, 1], [], []>} : vector<1x64xf32>, vector<64x4xf32>, vector<1x4xf32> -> vector<1x4xf32>
    %cst_7 = arith.constant 0.000000e+00 : f32
    %7 = vector.broadcast %cst_7 : f32 to vector<1x4xf32>
    %8 = arith.maximumf %6, %7 : vector<1x4xf32>
    %c0_8 = arith.constant 0 : index
    %c0_9 = arith.constant 0 : index
    %9 = vector.load %arg2[%c0_8, %c0_9] : memref<64x4xf32, #tpu.memory_space<vmem>>, vector<64x4xf32>
    %cst_10 = arith.constant dense<0.000000e+00> : vector<1x4xf32>
    %10 = tpu.matmul %4, %9, %cst_10 {dimension_numbers = #tpu.dot_dimension_numbers<[1], [0], [0], [1], [0, 0, 1, 1], [], []>} : vector<1x64xf32>, vector<64x4xf32>, vector<1x4xf32> -> vector<1x4xf32>
    %cst_11 = arith.constant 0.000000e+00 : f32
    %11 = vector.broadcast %cst_11 : f32 to vector<1x4xf32>
    %12 = arith.maximumf %10, %11 : vector<1x4xf32>
    %c0_12 = arith.constant 0 : index
    %c0_13 = arith.constant 0 : index
    %13 = vector.load %arg3[%c0_12, %c0_13] : memref<4x64xf32, #tpu.memory_space<vmem>>, vector<4x64xf32>
    %cst_14 = arith.constant dense<0.000000e+00> : vector<1x64xf32>
    %14 = tpu.matmul %8, %13, %cst_14 {dimension_numbers = #tpu.dot_dimension_numbers<[1], [0], [0], [1], [0, 0, 1, 1], [], []>} : vector<1x4xf32>, vector<4x64xf32>, vector<1x64xf32> -> vector<1x64xf32>
    %c0_15 = arith.constant 0 : index
    %c0_16 = arith.constant 0 : index
    %15 = vector.load %arg3[%c0_15, %c0_16] : memref<4x64xf32, #tpu.memory_space<vmem>>, vector<4x64xf32>
    %cst_17 = arith.constant dense<0.000000e+00> : vector<1x64xf32>
    %16 = tpu.matmul %12, %15, %cst_17 {dimension_numbers = #tpu.dot_dimension_numbers<[1], [0], [0], [1], [0, 0, 1, 1], [], []>} : vector<1x4xf32>, vector<4x64xf32>, vector<1x64xf32> -> vector<1x64xf32>
    %17 = arith.addf %14, %16 : vector<1x64xf32>
    %18 = arith.negf %17 : vector<1x64xf32>
    %19 = math.exp %18 : vector<1x64xf32>
    %cst_18 = arith.constant 1.000000e+00 : f32
    %20 = vector.broadcast %cst_18 : f32 to vector<1x64xf32>
    %21 = arith.addf %20, %19 : vector<1x64xf32>
    %22 = arith.divf %20, %21 : vector<1x64xf32>
    %23 = vector.shape_cast %22 : vector<1x64xf32> to vector<1x1x64xf32>
    %c0_19 = arith.constant 0 : index
    %c0_20 = arith.constant 0 : index
    %c0_21 = arith.constant 0 : index
    %24 = vector.load %arg4[%c0_19, %c0_20, %c0_21] : memref<1x1x64xf32, #tpu.memory_space<vmem>>, vector<1x1x64xf32>
    tpu.vector_store %arg4[%c0_19, %c0_20, %c0_21], %23 {strides = array<i32>} : memref<1x1x64xf32, #tpu.memory_space<vmem>>, vector<1x1x64xf32>,
    return
  }
  func.func @transform_0(%arg0: i32) -> (i32, i32, i32) {
    %c0_i32 = arith.constant 0 : i32
    %c0_i32_0 = arith.constant 0 : i32
    %c0_i32_1 = arith.constant 0 : i32
    return %arg0, %c0_i32, %c0_i32_0 : i32, i32, i32
  }
  func.func @transform_1(%arg0: i32) -> (i32, i32) {
    %c0_i32 = arith.constant 0 : i32
    %c0_i32_0 = arith.constant 0 : i32
    %c0_i32_1 = arith.constant 0 : i32
    return %c0_i32, %c0_i32_0 : i32, i32
  }
  func.func @transform_2(%arg0: i32) -> (i32, i32) {
    %c0_i32 = arith.constant 0 : i32
    %c0_i32_0 = arith.constant 0 : i32
    %c0_i32_1 = arith.constant 0 : i32
    return %c0_i32, %c0_i32_0 : i32, i32
  }
  func.func @transform_3(%arg0: i32) -> (i32, i32, i32) {
    %c0_i32 = arith.constant 0 : i32
    %c0_i32_0 = arith.constant 0 : i32
    %c0_i32_1 = arith.constant 0 : i32
    return %arg0, %c0_i32, %c0_i32_0 : i32, i32, i32
  }
}

</mosaic_0001>

<bundles_post_ra>
// kernel: tpu_custom_call.1
= control target key start
LH: loop header
LB: loop body
LE: loop exit
PB: predicated region body
PF: predicated region fallthrough
CT: control target
= control target key end

     0   :  { %8 = vsyncpa [#allocation3], 0  ;;  %s1470_s0 = inlined_call_operand.hbm [shape: f32[2,64,256], index: 0, kind: input, shape index: {}]   ;;  %s1471_s1 = inlined_call_operand.hbm [shape: f32[64,4], index: 1, kind: input, shape index: {}]   ;;  %s1472_s2 = inlined_call_operand.hbm [shape: f32[4,64], index: 2, kind: input, shape index: {}]   ;;  %s1473_s3 = inlined_call_operand.hbm [shape: f32[2,1,64], index: 3, kind: output, shape index: {}]  }
   0x1   :  { %10 = vsyncpa [#allocation3 + $0x1], 0 }
   0x2   :  { %11 = vsyncpa [#allocation6], 0 }
   0x3   :  { %12 = vsyncpa [#allocation4], 0 }
   0x4   :  { %14 = vsyncpa [#allocation4 + $0x1], 0  ;;  %s1195_s12 = smov 0   ;;  %s1197_s13 = smov 0  }
   0x5   :  { %s1199_s14 = smov 0   ;;  %s1201_s15 = smov 0  }
   0x6 LB: > { %s1216_s16 = sadd.s32 4294967295, %s1162_s15   ;;  %s810_s17 = sadd.s32 4294967294, %s1162_s15   ;;  %s1162_s15 = sphi %s1201_s15, %s1493_s15   ;;  %s1158_s14 = sphi %s1199_s14, %s1492_s14   ;;  %s1154_s13 = sphi %s1197_s13, %s1491_s13   ;;  %s1150_s12 = sphi %s1195_s12, %s1490_s12  }
   0x7   : > { %p40_p0 = scmp.ne.s32.totalorder %s1154_s13, %s1150_s12  ;;  %p1474_p1 = scmp.eq.s32.totalorder %s1216_s16, 0 }
   0x8   : > { %p112_p3 = scmp.eq.s32.totalorder %s810_s17, 1  ;;  %p811_p5 = scmp.ge.s32.totalorder %s1162_s15, 1 }
   0x9   : > { %p1225_p4 = por %p1474_p1, %p40_p0  ;;  %p119_p7 = scmp.lt.s32.totalorder %s1162_s15, 3 }
   0xa   : > { %p1230_p6 = por %p112_p3, %p40_p0  ;;  %s1164_s21 = smov [#allocation5]  }
   0xb   : > { %s1477_s18 = scalar_select %p1225_p4, 1, 0 }
   0xc   : > { %s1478_s19 = scalar_select %p1230_p6, 1, 0 }
   0xd   : > { %p1235_p8 = pnand %p811_p5, %p119_p7  ;;  %s131_s22 = sshll.u32 %s1164_s21, 4  ;;  %s1239_s22 = int_to_ptr.vmem [resolvable:$true] %s131_s22 }
   0xe   : > { %s1165_s24 = smov [#allocation7]   ;;  %s1006_s28 = scalar_lea.hbm %s1471_s1, 1024 }
   0xf   : > { %p940_p9 = pneg %p1235_p8  ;;  %s145_s25 = sshll.u32 %s1165_s24, 4  ;;  %s1250_s25 = int_to_ptr.vmem [resolvable:$true] %s145_s25 }
  0x10   : > { %p1007_p12 = scmp.ne.s32.totalorder %s1471_s1, %s1006_s28  ;;  %p1013_p5 = scmp.lt.u32.totalorder %s1006_s28, %s1471_s1 }
  0x11   : > { %p1246_p11 = pnand %p940_p9, %p1474_p1 }
  0x13   : > { %p1008_p13 = pneg %p1246_p11 }
  0x15   : > { %p1009_p0 = pnand %p1008_p13, %p1007_p12 }
  0x17   : > { %p1010_p3 = pneg %p1009_p0 }
  0x19   : > { %p1015_p7 = pnand %p1013_p5, %p1010_p3 }
  0x1b   : > { %1018 = shalt.err (!%p1015_p7)
}
  0x1c   : > { %s1019_s6 = scalar_lea.vmem %s1239_s22, 1024  ;;  %p1027_p2 = scmp.lt.s32.totalorder %s1239_s22, %s1239_s22 }
  0x1d   : > { %p1020_p9 = scmp.ne.s32.totalorder %s1239_s22, %s1019_s6  ;;  %p1028_p12 = scmp.lt.s32.totalorder %s1019_s6, %s1019_s6 }
  0x1f   : > { %p1022_p10 = pnand %p1020_p9, %p1008_p13  ;;  %p1029_p0 = por %p1028_p12, %p1027_p2 }
  0x21   : > { %p1023_p1 = pneg %p1022_p10 }
  0x23   : > { %p1030_p6 = pnand %p1029_p0, %p1023_p1 }
  0x25   : > { %1033 = shalt.err (!%p1030_p6)
}
  0x26   : > { %s1166_s7 = smov 128   ;;  %s1167_s8 = smov 8  }
  0x27   : > { %943 = dma.hbm_to_vmem [thread:$0]  (!%p1246_p11), %s1471_s1, 1024, %s1239_s22, [#allocation6], %s1166_s7, %s1166_s7, %s1167_s8  }
  0x28   : > { %s1034_s21 = scalar_lea.hbm %s1472_s2, 64 }
  0x29   : > { %p1035_p2 = scmp.ne.s32.totalorder %s1472_s2, %s1034_s21  ;;  %p1041_p10 = scmp.lt.u32.totalorder %s1034_s21, %s1472_s2 }
  0x2b   : > { %p1037_p1 = pnand %p1035_p2, %p1008_p13 }
  0x2d   : > { %p1038_p6 = pneg %p1037_p1 }
  0x2f   : > { %p1043_p3 = pnand %p1041_p10, %p1038_p6 }
  0x31   : > { %1046 = shalt.err (!%p1043_p3)
}
  0x32   : > { %s1047_s22 = scalar_lea.vmem %s1250_s25, 64  ;;  %p1055_p12 = scmp.lt.s32.totalorder %s1250_s25, %s1250_s25 }
  0x33   : > { %p1048_p5 = scmp.ne.s32.totalorder %s1250_s25, %s1047_s22  ;;  %p1056_p0 = scmp.lt.s32.totalorder %s1047_s22, %s1047_s22 }
  0x35   : > { %p1050_p7 = pnand %p1048_p5, %p1008_p13  ;;  %p1057_p2 = por %p1056_p0, %p1055_p12 }
  0x37   : > { %p1051_p9 = pneg %p1050_p7 }
  0x39   : > { %p1058_p1 = pnand %p1057_p2, %p1051_p9 }
  0x3b   : > { %1061 = shalt.err (!%p1058_p1)
}
  0x3c   : > { %946 = dma.hbm_to_vmem [thread:$0]  (!%p1246_p11), %s1472_s2, 64, %s1250_s25, [#allocation6]  }
  0x3d   : > { %s1305_s4 = sadd.s32 1, %s1162_s15   ;;  %s27_s23 = sadd.s32 1, %s1158_s14 }
  0x3e   : > { %s24_s5 = ssub.s32 %s1162_s15, %s1305_s4  ;;  %p34_p13 = scmp.ne.s32.totalorder %s1158_s14, %s1154_s13 }
  0x3f   : > { %p25_p6 = scmp.eq.s32.totalorder %s24_s5, 0  ;;  %p35_p10 = scmp.eq.s32.totalorder %s1162_s15, 0 }
  0x40   : > { %p1481_p3 = scmp.eq.s32.totalorder %s1216_s16, 1  ;;  %p957_p7 = scmp.lt.s32.totalorder %s1162_s15, 2 }
  0x41   : > { %s1321_s7 = scalar_select %p25_p6, %s1158_s14, %s27_s23  }
  0x42   : > { %p1315_p5 = por %p1481_p3, %p34_p13  ;;  %p36_p9 = por %p35_p10, %p34_p13 }
  0x43   : > { %s156_s8 = sand.u32 1, %s1158_s14   ;;  %s832_s25 = sshll.u32 %s1162_s15, 11 }
  0x44   : > { %s1482_s6 = scalar_select %p1315_p5, 1, 0 }
  0x45   : > { %s815_s9 = sshll.u32 %s156_s8, 7  ;;  %s1328_s17 = scalar_lea.hbm %s1470_s0, %s832_s25 }
  0x46   : > { %s160_s21 = scalar_lea.vmem [#allocation2], %s815_s9  ;;  %p1332_p11 = pnand %p957_p7, %p36_p9 }
  0x47   : > { %s167_s24 = sshll.u32 %s160_s21, 4  ;;  %s1336_s27 = scalar_lea.sflag [#allocation3], %s156_s8  ;;  %s1330_s24 = int_to_ptr.vmem [resolvable:$true] %s167_s24 }
  0x48   : > { %s1062_s28 = scalar_lea.hbm %s1328_s17, 2048  ;;  %p1064_p0 = pneg %p1332_p11 }
  0x49   : > { %p1063_p12 = scmp.ne.s32.totalorder %s1328_s17, %s1062_s28  ;;  %s1067_s30 = scalar_lea.hbm %s1470_s0, 4096 }
  0x4a   : > { %p1068_p13 = scmp.lt.u32.totalorder %s1328_s17, %s1470_s0  ;;  %p1069_p6 = scmp.lt.u32.totalorder %s1067_s30, %s1062_s28 }
  0x4b   : > { %p1065_p2 = pnand %p1064_p0, %p1063_p12  ;;  %p1071_p3 = scmp.lt.u32.totalorder %s1062_s28, %s1328_s17 }
  0x4c   : > { %p1070_p10 = por %p1069_p6, %p1068_p13 }
  0x4d   : > { %p1066_p1 = pneg %p1065_p2 }
  0x4e   : > { %p1072_p7 = por %p1071_p3, %p1070_p10 }
  0x50   : > { %p1073_p9 = pnand %p1072_p7, %p1066_p1 }
  0x52   : > { %1076 = shalt.err (!%p1073_p9)
}
  0x53   : > { %s1077_s8 = scalar_lea.vmem %s1330_s24, 2048  ;;  %s1168_s9 = smov [#allocation2]  }
  0x54   : > { %p1078_p12 = scmp.ne.s32.totalorder %s1330_s24, %s1077_s8  ;;  %s1082_s25 = sshll.u32 %s1168_s9, 4  ;;  %s1083_s25 = int_to_ptr.vmem [resolvable:$false] %s1082_s25 }
  0x55   : > { %s1084_s10 = scalar_lea.vmem %s1083_s25, 4096  ;;  %p1085_p4 = scmp.lt.s32.totalorder %s1330_s24, %s1083_s25 }
  0x56   : > { %p1080_p2 = pnand %p1078_p12, %p1064_p0  ;;  %p1086_p13 = scmp.lt.s32.totalorder %s1084_s10, %s1077_s8 }
  0x58   : > { %p1081_p5 = pneg %p1080_p2  ;;  %p1087_p6 = por %p1086_p13, %p1085_p4 }
  0x5a   : > { %p1088_p10 = pnand %p1087_p6, %p1081_p5 }
  0x5c   : > { %1091 = shalt.err (!%p1088_p10)
}
  0x5d   : > { %s1169_s11 = smov 256   ;;  %s1170_s21 = smov 16  }
  0x5e   : > { %950 = dma.hbm_to_vmem [thread:$0]  (!%p1332_p11), %s1328_s17, 2048, %s1330_s24, %s1336_s27, %s1169_s11, %s1169_s11, %s1170_s21  }
  0x5f   : > { %179 = sbr.rel (%p1235_p8) target bundleno = 752 (0x2f0), region = 32  ;;  %s1367_s28 = sand.u32 (!%p1235_p8), 1, %s1154_s13  }
  0x60   : > { %s819_s22 = sshll.u32 (!%p1235_p8), %s1367_s28, 7  ;;  %s182_s29 = scalar_lea.sflag (!%p1235_p8), [#allocation3], %s1367_s28 }
  0x61   : > { %s1371_s30 = scalar_lea.vmem (!%p1235_p8), [#allocation2], %s819_s22  ;;  %p1484_p4 = scmp.ne.s32.totalorder (!%p1235_p8), %s1477_s18, 0 }
  0x66   : > { %1137 = dma.done.wait (%p1484_p4), %s182_s29, 2048  }
  0x67   : > { %1139 = vsyncadd (%p1484_p4), %s182_s29, 4294965248  ;;  %p1485_p5 = scmp.eq.s32.totalorder %s1216_s16, 0 }
  0x69   : > { %1141 = dma.done.wait (%p1485_p5), [#allocation6], 1088   ;;  %p1486_p8 = pmov %p1485_p5 }
  0x6a   : > { %v219_v0 = vld [vmem:[%s1371_s30 + $0x20] sm:$0xff]  ;;  %v220_v1 = vld [vmem:[%s1371_s30 + $0x28] sm:$0xff]  ;;  %v221_v5 = vld [vmem:[%s1371_s30 + $0x30] sm:$0xff]  ;;  %v1171_v35 = vmov 0.0|0.0   ;;  %vm1172_vm0 = vmmov 0   ;;  %v1173_v45 = vmov 0.0   ;;  %v303_v48 = vlaneseq }
  0x6b   : > { %1143 = vsyncadd (%p1486_p8), [#allocation6], 4294966208  ;;  %v215_v2 = vld [vmem:[%s1371_s30] sm:$0xff]  ;;  %v237_v3 = vadd.f32 %v220_v1, %v219_v0  ;;  %v216_v4 = vld [vmem:[%s1371_s30 + $0x8] sm:$0xff]  ;;  %v269_v16 = vmax.f32 %v219_v0, %v220_v1  ;;  %903 = vmatprep.subr.bf16.mxu0 %v1171_v35  ;;  %915 = vmatprep.subr.bf16.mxu1 %v1171_v35  ;;  %vm314_vm1 = vcmask 130112   ;;  %vm321_vm2 = vcmask 195712  }
  0x6c   : > { %v222_v6 = vld [vmem:[%s1371_s30 + $0x38] sm:$0xff]  ;;  %v231_v7 = vadd.f32 %v216_v4, %v215_v2  ;;  %v217_v8 = vld [vmem:[%s1371_s30 + $0x10] sm:$0xff]  ;;  %v263_v13 = vmax.f32 %v215_v2, %v216_v4  ;;  %v223_v14 = vld [vmem:[%s1371_s30 + $0x40] sm:$0xff]  ;;  %871 = vmatprep.mubr.msk.f32.mxu0 %vm1172_vm0, %v1173_v45  ;;  %890 = vmatprep.mubr.msk.f32.mxu1 %vm1172_vm0, %v1173_v45  ;;  %v304_v51 = vand.u32 127, %v303_v48  ;;  %v306_v55 = vshrl.u32 %v303_v48, 7  ;;  %s829_s18 = sshll.u32 %s1216_s16, 4 }
  0x6d   : > { %v218_v9 = vld [vmem:[%s1371_s30 + $0x18] sm:$0xff]  ;;  %238 = vadd.xlane.f32.xlu1 %v237_v3  ;;  %v240_v10 = vadd.f32 %v222_v6, %v221_v5  ;;  %v224_v15 = vld [vmem:[%s1371_s30 + $0x48] sm:$0xff]  ;;  %v225_v18 = vld [vmem:[%s1371_s30 + $0x50] sm:$0xff]  ;;  %v272_v20 = vmax.f32 %v221_v5, %v222_v6  ;;  %vm328_vm3 = vcmask 261312   ;;  %vm335_vm4 = vcmask 326912   ;;  %s214_s20 = scalar_lea.vmem [#allocation8], %s1367_s28  ;;  %s1426_s27 = scalar_lea.hbm %s1473_s3, %s829_s18 }
  0x6e   : > { %232 = vadd.xlane.f32.xlu0 %v231_v7  ;;  %v234_v11 = vadd.f32 %v218_v9, %v217_v8  ;;  %v266_v12 = vmax.f32 %v217_v8, %v218_v9  ;;  %v243_v17 = vadd.f32 %v224_v15, %v223_v14  ;;  %v226_v19 = vld [vmem:[%s1371_s30 + $0x58] sm:$0xff]  ;;  %v227_v22 = vld [vmem:[%s1371_s30 + $0x60] sm:$0xff]  ;;  %v228_v23 = vld [vmem:[%s1371_s30 + $0x68] sm:$0xff]  ;;  %v275_v24 = vmax.f32 %v223_v14, %v224_v15  ;;  %s725_s17 = sshll.u32 %s214_s20, 4  ;;  %s713_s23 = scalar_lea.sflag [#allocation4], %s1367_s28  ;;  %s1428_s17 = int_to_ptr.vmem [resolvable:$true] %s725_s17 }
  0x6f   : > { %v246_v21 = vadd.f32 %v226_v19, %v225_v18  ;;  %v249_v25 = vadd.f32 %v228_v23, %v227_v22  ;;  %v229_v26 = vld [vmem:[%s1371_s30 + $0x70] sm:$0xff]  ;;  %v230_v27 = vld [vmem:[%s1371_s30 + $0x78] sm:$0xff]  ;;  %v278_v28 = vmax.f32 %v225_v18, %v226_v19  ;;  %v281_v31 = vmax.f32 %v227_v22, %v228_v23  ;;  %v287_v32 = vld [vmem:[#allocation5] sm:$0xff]  ;;  %s1092_s5 = scalar_lea.vmem %s1428_s17, 16  ;;  %p1487_p0 = scmp.ne.s32.totalorder %s1482_s6, 0 }
  0x70   : > { %v252_v29 = vadd.f32 %v230_v27, %v229_v26  ;;  %v284_v30 = vmax.f32 %v229_v26, %v230_v27  ;;  %v288_v33 = vld [vmem:[#allocation5 + $0x8] sm:$0xff]  ;;  %v289_v36 = vld [vmem:[#allocation5 + $0x10] sm:$0xff]  ;;  %v290_v37 = vld [vmem:[#allocation5 + $0x18] sm:$0xff]  ;;  %v309_v52 = vadd.s32 4294967288, %v304_v51  ;;  %v316_v59 = vadd.s32 4294967280, %v304_v51  ;;  %p1093_p11 = scmp.ne.s32.totalorder %s1428_s17, %s1092_s5  ;;  %s1174_s16 = smov [#allocation8]  }
  0x71   : > { %241 = vadd.xlane.f32.xlu1 %v240_v10  ;;  %v904_v34 = vpack.c.bf16 %v288_v33, %v287_v32  ;;  %v907_v38 = vpack.c.bf16 %v290_v37, %v289_v36  ;;  %v291_v39 = vld [vmem:[#allocation5 + $0x20] sm:$0xff]  ;;  %v292_v40 = vld [vmem:[#allocation5 + $0x28] sm:$0xff]  ;;  %v293_v42 = vld [vmem:[#allocation5 + $0x30] sm:$0xff]  ;;  %v307_v61 = vsub.s32 %v304_v51, %v306_v55  ;;  %v323_v63 = vadd.s32 4294967272, %v304_v51  ;;  %s1096_s8 = sshll.u32 %s1174_s16, 4  ;;  %s1097_s8 = int_to_ptr.vmem [resolvable:$false] %s1096_s8 }
  0x72   : > { %235 = vadd.xlane.f32.xlu0 %v234_v11  ;;  %v910_v41 = vpack.c.bf16 %v292_v40, %v291_v39  ;;  %v294_v43 = vld [vmem:[#allocation5 + $0x38] sm:$0xff]  ;;  %v312_v56 = vsub.s32 %v309_v52, %v306_v55  ;;  %v330_v0 = vadd.s32 4294967264, %v304_v51  ;;  %v337_v3 = vadd.s32 4294967256, %v304_v51  ;;  %p1094_p1 = pnand %p1093_p11, %p1487_p0  ;;  %s1098_s9 = scalar_lea.vmem %s1097_s8, 32 }
  0x73   : > { %905 = vmatpush3.bf16.msra.mxu0 %v904_v34  ;;  %917 = vmatpush3.bf16.msra.mxu1 %v904_v34  ;;  %v913_v44 = vpack.c.bf16 %v294_v43, %v293_v42  ;;  %v319_v4 = vsub.s32 %v316_v59, %v306_v55  ;;  %v344_v7 = vadd.s32 4294967248, %v304_v51  ;;  %v326_v9 = vsub.s32 %v323_v63, %v306_v55  ;;  %p1099_p7 = scmp.lt.s32.totalorder %s1428_s17, %s1097_s8  ;;  %p1100_p9 = scmp.lt.s32.totalorder %s1098_s9, %s1092_s5 }
  0x74   : > { %906 = vmatprep.subr.bf16.mxu0 %v1171_v35  ;;  %918 = vmatprep.subr.bf16.mxu1 %v1171_v35  ;;  %v333_v11 = vsub.s32 %v330_v0, %v306_v55  ;;  %v340_v14 = vsub.s32 %v337_v3, %v306_v55  ;;  %vm342_vm5 = vcmask 392512   ;;  %vm349_vm6 = vcmask 458112   ;;  %p1095_p3 = pneg %p1094_p1 }
  0x75   : > { %267 = vmax.xlane.f32.xlu1 %v266_v12  ;;  %v347_v19 = vsub.s32 %v344_v7, %v306_v55  ;;  %vm356_vm7 = vcmask 523712   ;;  %vm358_vm8 = vcmask 523264   ;;  %vm557_vm9 = vcmask 1043456   ;;  %p1101_p12 = por %p1100_p9, %p1099_p7 }
  0x76   : > { %264 = vmax.xlane.f32.xlu0 %v263_v13  ;;  %vm553_vm10 = vcmask 31744   ;;  %vm710_vm11 = vcmask 516096  }
  0x77   : > { %908 = vmatpush3.bf16.msra.mxu0 %v907_v38  ;;  %920 = vmatpush3.bf16.msra.mxu1 %v907_v38  ;;  %p1102_p2 = pnand %p1101_p12, %p1095_p3 }
  0x78   : > { %909 = vmatprep.subr.bf16.mxu0 %v1171_v35  ;;  %921 = vmatprep.subr.bf16.mxu1 %v1171_v35 }
  0x79   : > { %270 = vmax.xlane.f32.xlu1 %v269_v16 }
  0x7a   : > { %244 = vadd.xlane.f32.xlu0 %v243_v17  ;;  %v351_v17 = vadd.s32 4294967240, %v304_v51 }
  0x7b   : > { %911 = vmatpush3.bf16.msra.mxu0 %v910_v41  ;;  %923 = vmatpush3.bf16.msra.mxu1 %v910_v41 }
  0x7c   : > { %912 = vmatprep.subr.bf16.mxu0 %v1171_v35  ;;  %924 = vmatprep.subr.bf16.mxu1 %v1171_v35 }
  0x7d   : > { %273 = vmax.xlane.f32.xlu1 %v272_v20 }
  0x7e   : > { %247 = vadd.xlane.f32.xlu0 %v246_v21 }
  0x7f   : > { %914 = vmatpush3.bf16.msra.mxu0 %v913_v44  ;;  %926 = vmatpush3.bf16.msra.mxu1 %v913_v44 }
  0x80   : > { %893 = vmatprep.subr.mxu1 %v1173_v45  ;;  %898 = vmatprep.subr.mxu0 %v1173_v45 }
  0x81   : > { %276 = vmax.xlane.f32.xlu1 %v275_v24 }
  0x82   : > { %250 = vadd.xlane.f32.xlu0 %v249_v25 }
  0x85   : > { %279 = vmax.xlane.f32.xlu1 %v278_v28 }
  0x86   : > { %253 = vadd.xlane.f32.xlu0 %v252_v29 }
  0x89   : > { %285 = vmax.xlane.f32.xlu1 %v284_v30  ;;  %v354_v30 = vsub.s32 %v351_v17, %v306_v55  ;;  %v552_v55 = vld [vmem:[#allocation7] sm:$0xf] }
  0x8a   : > { %282 = vmax.xlane.f32.xlu0 %v281_v31 }
  0xfa   : > { %v239_v46 = vpop.xlane.xlu1 %238 }
  0xfb   : > { %v233_v47 = vpop.xlane.xlu0 %232  ;;  %v257_v5 = vmul.f32 0.00390625, %v239_v46 }
  0xfc   : > { %v255_v62 = vmul.f32 0.00390625, %v233_v47 }
  0xfd   : > { %v320_v18 = vrot.slane %v257_v5, %v319_v4 }
  0xfe   : > { %v242_v49 = vpop.xlane.xlu1 %241  ;;  %v308_v8 = vrot.slane %v255_v62, %v307_v61 }
  0xff   : > { %v236_v50 = vpop.xlane.xlu0 %235  ;;  %v258_v10 = vmul.f32 0.00390625, %v242_v49 }
 0x100   : > { %v256_v57 = vmul.f32 0.00390625, %v236_v50 }
 0x101   : > { %v327_v21 = vrot.slane %v258_v10, %v326_v9 }
 0x102   : > { %v268_v53 = vpop.xlane.xlu1 %267  ;;  %v313_v1 = vrot.slane %v256_v57, %v312_v56 }
 0x103   : > { %v265_v54 = vpop.xlane.xlu0 %264  ;;  %v447_v23 = vrot.slane %v268_v53, %v312_v56 }
 0x104   : > { %v315_v13 = vsel %vm314_vm1, %v313_v1, %v308_v8  ;;  %v443_v24 = vrot.slane %v265_v54, %v307_v61 }
 0x105   : > { %v322_v25 = vsel %vm321_vm2, %v320_v18, %v315_v13 }
 0x106   : > { %v271_v58 = vpop.xlane.xlu1 %270  ;;  %v329_v34 = vsel %vm328_vm3, %v327_v21, %v322_v25  ;;  %v448_v37 = vsel %vm314_vm1, %v447_v23, %v443_v24 }
 0x107   : > { %v245_v60 = vpop.xlane.xlu0 %244  ;;  %v452_v27 = vrot.slane %v271_v58, %v319_v4 }
 0x108   : > { %v259_v12 = vmul.f32 0.00390625, %v245_v60 }
 0x109   : > { %v453_v40 = vsel %vm321_vm2, %v452_v27, %v448_v37 }
 0x10a   : > { %v274_v2 = vpop.xlane.xlu1 %273  ;;  %v334_v26 = vrot.slane %v259_v12, %v333_v11 }
 0x10b   : > { %v248_v6 = vpop.xlane.xlu0 %247  ;;  %v457_v31 = vrot.slane %v274_v2, %v326_v9 }
 0x10c   : > { %v260_v15 = vmul.f32 0.00390625, %v248_v6  ;;  %v336_v38 = vsel %vm335_vm4, %v334_v26, %v329_v34 }
 0x10d   : > { %v458_v44 = vsel %vm328_vm3, %v457_v31, %v453_v40 }
 0x10e   : > { %v277_v16 = vpop.xlane.xlu1 %276  ;;  %v341_v28 = vrot.slane %v260_v15, %v340_v14 }
 0x10f   : > { %v251_v20 = vpop.xlane.xlu0 %250  ;;  %v462_v35 = vrot.slane %v277_v16, %v333_v11 }
 0x110   : > { %v261_v22 = vmul.f32 0.00390625, %v251_v20  ;;  %v343_v41 = vsel %vm342_vm5, %v341_v28, %v336_v38 }
 0x111   : > { %v463_v49 = vsel %vm335_vm4, %v462_v35, %v458_v44 }
 0x112   : > { %v280_v29 = vpop.xlane.xlu1 %279  ;;  %v348_v32 = vrot.slane %v261_v22, %v347_v19 }
 0x113   : > { %v254_v33 = vpop.xlane.xlu0 %253  ;;  %v467_v39 = vrot.slane %v280_v29, %v340_v14 }
 0x114   : > { %v262_v36 = vmul.f32 0.00390625, %v254_v33  ;;  %v350_v48 = vsel %vm349_vm6, %v348_v32, %v343_v41 }
 0x115   : > { %v468_v52 = vsel %vm342_vm5, %v467_v39, %v463_v49 }
 0x116   : > { %v355_v42 = vrot.slane %v262_v36, %v354_v30  ;;  %v286_v43 = vpop.xlane.xlu1 %285 }
 0x117   : > { %v283_v46 = vpop.xlane.xlu0 %282  ;;  %v477_v47 = vrot.slane %v286_v43, %v354_v30 }
 0x118   : > { %v472_v50 = vrot.slane %v283_v46, %v347_v19  ;;  %v357_v51 = vsel %vm356_vm7, %v355_v42, %v350_v48 }
 0x119   : > { %872 = vmatmul.mubr.msk.f32.vlgmr.msra.gmra.mrb[0].mxu0 %vm358_vm8, %v357_v51 }
 0x11a   : > { %v473_v53 = vsel %vm349_vm6, %v472_v50, %v468_v52  ;;  %900 = vmatprep.mubr.msk.f32.mxu0 %vm1172_vm0, %v1173_v45  ;;  %899 = vmatpush3.msk.msra.mxu0 %vm557_vm9, %v552_v55 }
 0x11b   : > { %v478_v54 = vsel %vm356_vm7, %v477_v47, %v473_v53 }
 0x11c   : > { %891 = vmatmul.mubr.msk.f32.vlgmr.msra.gmra.mrb[0].mxu1 %vm358_vm8, %v478_v54 }
 0x11d   : > { %895 = vmatprep.mubr.msk.f32.mxu1 %vm1172_vm0, %v1173_v45  ;;  %894 = vmatpush3.msk.msra.mxu1 %vm557_vm9, %v552_v55 }
 0x1ec   : > { %v427_v56 = vpop.f32.mrb[0].mxu0 }
 0x1ed   : > { %v431_v57 = vmax.f32 %v427_v56, 0.0  ;;  %v873_v58 = vpop.f32.mrb[1].mxu0 }
 0x1ef   : > { %v547_v59 = vpop.f32.mrb[0].mxu1  ;;  %901 = vmatmul.mubr.msk.f32.vlgmr.msra.gmra.mrb[2].mxu0 %vm553_vm10, %v431_v57 }
 0x1f0   : > { %v551_v60 = vmax.f32 %v547_v59, 0.0  ;;  %v892_v61 = vpop.f32.mrb[1].mxu1 }
 0x1f2   : > { %896 = vmatmul.mubr.msk.f32.vlgmr.msra.gmra.mrb[2].mxu1 %vm553_vm10, %v551_v60 }
 0x2c2   : > { %v700_v62 = vpop.f32.mrb[2].mxu0 }
 0x2c3   : > { %v902_v63 = vpop.f32.mrb[3].mxu0 }
 0x2c5   : > { %v627_v0 = vpop.f32.mrb[2].mxu1 }
 0x2c6   : > { %v701_v45 = vadd.f32 %v700_v62, %v627_v0  ;;  %v897_v1 = vpop.f32.mrb[3].mxu1 }
 0x2c8   : > { %v828_v2 = vmul.f32 -1.442695, %v701_v45 }
 0x2ca   : > { %1002 = vpow2.f32 %v828_v2 }
 0x2d4   : > { %v1003_v3 = vpop.eup %1002 }
 0x2d5   : > { %v707_v4 = vadd.f32 1.0, %v1003_v3 }
 0x2d7   : > { %1004 = vrcp.f32 %v707_v4 }
 0x2e1   : > { %v1005_v5 = vpop.eup %1004 }
 0x2e2   : > { %711 = vst.msk [vmem:[%s214_s20] sm:$0x1] %vm710_vm11, %v1005_v5 }
 0x2e3   : > { %1105 = shalt.err (!%p1102_p2)
}
 0x2e4   : > { %s1106_s25 = scalar_lea.hbm %s1426_s27, 16  ;;  %s1110_s21 = scalar_lea.hbm %s1473_s3, 32 }
 0x2e5   : > { %p1107_p13 = scmp.ne.s32.totalorder %s1426_s27, %s1106_s25  ;;  %p1111_p4 = scmp.lt.u32.totalorder %s1426_s27, %s1473_s3 }
 0x2e6   : > { %p1112_p5 = scmp.lt.u32.totalorder %s1110_s21, %s1106_s25  ;;  %p1114_p11 = scmp.lt.u32.totalorder %s1106_s25, %s1426_s27 }
 0x2e7   : > { %p1108_p6 = pnand %p1107_p13, %p1487_p0 }
 0x2e8   : > { %p1113_p8 = por %p1112_p5, %p1111_p4 }
 0x2e9   : > { %p1109_p10 = pneg %p1108_p6 }
 0x2ea   : > { %p1115_p1 = por %p1114_p11, %p1113_p8 }
 0x2ec   : > { %p1116_p3 = pnand %p1115_p1, %p1109_p10 }
 0x2ee   : > { %1119 = shalt.err (!%p1116_p3)
}
 0x2ef   : > { %938 = dma.vmem_to_hbm [thread:$0]  (%p1487_p0), %s1428_s17, 16, %s1426_s27, %s713_s23  }
 0x2f0 PF: > { %s737_s29 = sand.u32 1, %s1150_s12   ;;  %p1488_p7 = scmp.ne.s32.totalorder %s1478_s19, 0 }
 0x2f1   : > { %p1489_p9 = scmp.ge.s32.totalorder %s1162_s15, 2  ;;  %s738_s30 = scalar_lea.sflag [#allocation4], %s737_s29 }
 0x2f3   : > { %p952_p12 = pnand %p1489_p9, %p1488_p7 }
 0x2f5   : > { %1145 = dma.done.wait (!%p952_p12), %s738_s30, 16  }
 0x2f6   : > { %1147 = vsyncadd (!%p952_p12), %s738_s30, 4294967280  ;;  %p17_p2 = scmp.ge.s32.totalorder %s1305_s4, 4   ;;  %s1490_s12 = smov %s1154_s13 }
 0x2f7   : > { %s1491_s13 = smov %s1158_s14  ;;  %s1492_s14 = smov %s1321_s7 }
 0x2f8   : > { %s1493_s15 = smov %s1305_s4  ;;  %19 = sbr.rel (!%p17_p2) target bundleno = 6 (0x6), region = 85 }
 0x2ff   :  { %742 = vsyncpa [#allocation3], 1 }
 0x300   :  { %744 = vsyncpa [#allocation3 + $0x1], 1 }
 0x301   :  { %745 = vsyncpa [#allocation6], 1 }
 0x302   :  { %746 = vsyncpa [#allocation4], 1 }
 0x303   :  { %748 = vsyncpa [#allocation4 + $0x1], 1 }

</bundles_post_ra>
